<compile_context>
chip_gen: v5e
topology: v5e:2x2
jax: 0.10.0
libtpu: 0.0.40
codegen_flags: <defaults>
</compile_context>

<pallas_src>
import functools

import jax
import jax.numpy as jnp
from jax.experimental import pallas as pl
from jax.experimental.pallas import tpu as pltpu

LANE = 128


def _round_up(n, m):
    return ((n + m - 1) // m) * m


def mlp_kernel(x_ref, w1_ref, b1_ref, w2_ref, b2_ref, o_ref):
    # x_ref: (TM, 784) bf16        w1_ref: (784, 128) bf16   b1_ref: (1, 128) f32
    # w2_ref: (128, 128) f32       b2_ref: (1, 128) f32      o_ref: (TM, 128) f32
    x = x_ref[...]

    # linear1 (MXU, bf16 inputs, f32 accumulate) + bias + ReLU (VPU, f32)
    h = jnp.dot(x, w1_ref[...], preferred_element_type=jnp.float32) + b1_ref[...]
    h = jnp.maximum(h, 0.0)

    # linear2 in f32.  K=10 of 128 lanes is wasted MXU work, but the kernel is
    # memory-bound on the x stream so the MXU slot has plenty of slack.
    logits = jnp.dot(h, w2_ref[...], preferred_element_type=jnp.float32) + b2_ref[...]

    # log_softmax along the lane axis.  Padded output lanes carry a -1e30 bias,
    # so they never win the max and exp() underflows to exactly 0 in the sum.
    m = jnp.max(logits, axis=-1, keepdims=True)
    shifted = logits - m
    lse = jnp.log(jnp.sum(jnp.exp(shifted), axis=-1, keepdims=True))
    o_ref[...] = (shifted - lse).astype(o_ref.dtype)


@functools.partial(jax.jit, static_argnames=("tile_m",))
def mlp_forward(x_nchw, w1, b1, w2, b2, *, tile_m=1024):
    """x_nchw: (B, C, H, W) with C*H*W == 784. Returns (B, 10) log-probs (f32).

    w1: (784, 10), b1: (10,), w2: (10, 10), b2: (10,)  -- weights stored as
    (in_features, out_features), i.e. the transpose of PyTorch's layout.
    """
    B = x_nchw.shape[0]
    x_flat = x_nchw.reshape(B, -1)          # same as torch.flatten(x, 1)
    D_in = x_flat.shape[1]
    D_hid = w1.shape[1]
    D_out = w2.shape[1]

    # ---- lane-pad the narrow feature dims (done once, on tiny weights) ----
    D_hid_p = _round_up(max(D_hid, LANE), LANE)
    D_out_p = _round_up(max(D_out, LANE), LANE)
    NEG = jnp.float32(-1e30)

    w1_p = jnp.zeros((D_in, D_hid_p), jnp.float32).at[:, :D_hid].set(w1)
    b1_p = jnp.zeros((1, D_hid_p), jnp.float32).at[:, :D_hid].set(b1.reshape(1, -1))
    w2_p = jnp.zeros((D_hid_p, D_out_p), jnp.float32).at[:D_hid, :D_out].set(w2)
    b2_p = jnp.full((1, D_out_p), NEG, jnp.float32).at[:, :D_out].set(b2.reshape(1, -1))

    # ---- bf16 the dominant HBM stream (x) and the first-layer weights ----
    x_bf = x_flat.astype(jnp.bfloat16)
    w1_bf = w1_p.astype(jnp.bfloat16)

    # ---- batch tiling: full last tile by padding B up to a multiple of tm ----
    tm = min(tile_m, _round_up(B, 8))       # (8, 128) sublane/lane constraint
    B_pad = _round_up(B, tm)
    if B_pad != B:
        x_bf = jnp.pad(x_bf, ((0, B_pad - B), (0, 0)))
    grid = (B_pad // tm,)

    # NOTE: at tile_m=1024 the double-buffered x tile is ~3.5 MiB, well inside
    # every generation's default scoped-VMEM limit.  For tile_m >= 4096 on
    # v5e/v6e, raise pltpu.CompilerParams(vmem_limit_bytes=...) accordingly.
    out = pl.pallas_call(
        mlp_kernel,
        out_shape=jax.ShapeDtypeStruct((B_pad, D_out_p), jnp.float32),
        grid_spec=pltpu.PrefetchScalarGridSpec(
            num_scalar_prefetch=0,
            grid=grid,
            in_specs=[
                pl.BlockSpec((tm, D_in), lambda i: (i, 0)),        # streamed x
                pl.BlockSpec((D_in, D_hid_p), lambda i: (0, 0)),   # resident w1
                pl.BlockSpec((1, D_hid_p), lambda i: (0, 0)),      # resident b1
                pl.BlockSpec((D_hid_p, D_out_p), lambda i: (0, 0)),  # resident w2
                pl.BlockSpec((1, D_out_p), lambda i: (0, 0)),      # resident b2
            ],
            out_specs=pl.BlockSpec((tm, D_out_p), lambda i: (i, 0)),
        ),
        compiler_params=pltpu.CompilerParams(
            dimension_semantics=("parallel",),   # v7x: split batch over 2 TCs
        ),
    )(x_bf, w1_bf, b1_p, w2_p, b2_p)

    # Slice back to the logical (B, 10) log-probs.
    return out[:B, :D_out]


def init_params(key):
    # Deterministic init mimicking nn.Linear defaults (uniform +/- 1/sqrt(fan_in)).
    k1, k2, k3, k4 = jax.random.split(key, 4)
    lim1 = 1.0 / jnp.sqrt(784.0)
    lim2 = 1.0 / jnp.sqrt(10.0)
    # Stored as (in, out) = transpose of PyTorch's (out, in) weight.
    w1 = jax.random.uniform(k1, (784, 10), jnp.float32, -lim1, lim1)
    b1 = jax.random.uniform(k2, (10,), jnp.float32, -lim1, lim1)
    w2 = jax.random.uniform(k3, (10, 10), jnp.float32, -lim2, lim2)
    b2 = jax.random.uniform(k4, (10,), jnp.float32, -lim2, lim2)
    return w1, b1, w2, b2


if __name__ == "__main__":
    key = jax.random.PRNGKey(0)
    k_x, k_p = jax.random.split(key)

    # MNIST-like input: (B=8, C=1, H=28, W=28) -> flatten to (8, 784)
    x = jax.random.normal(k_x, (8, 1, 28, 28), jnp.float32)
    w1, b1, w2, b2 = init_params(k_p)

    out = mlp_forward(x, w1, b1, w2, b2)
    out = jax.block_until_ready(out)

    # Reference: pure JAX with the same bf16 rounding of the layer-1 inputs
    # (the kernel's MXU accumulates exact bf16 products in f32).
    x_flat = x.reshape(x.shape[0], -1)
    xb = x_flat.astype(jnp.bfloat16).astype(jnp.float32)
    w1b = w1.astype(jnp.bfloat16).astype(jnp.float32)
    h_ref = jnp.maximum(xb @ w1b + b1, 0.0)
    logits_ref = h_ref @ w2 + b2
    ref = jax.nn.log_softmax(logits_ref, axis=1)

    assert out.shape == (8, 10)
    assert bool(jnp.all(jnp.isfinite(out)))
    assert jnp.allclose(out, ref, atol=2e-3, rtol=2e-3)

    print("KERNEL_OK")
</pallas_src>

<mosaic_0001>
module attributes {stable_mosaic.version = 11 : i64} {
  func.func @mlp_kernel(%arg0: i32, %arg1: memref<8x784xbf16, #tpu.memory_space<vmem>>, %arg2: memref<784x128xbf16, #tpu.memory_space<vmem>>, %arg3: memref<1x128xf32, #tpu.memory_space<vmem>>, %arg4: memref<128x128xf32, #tpu.memory_space<vmem>>, %arg5: memref<1x128xf32, #tpu.memory_space<vmem>>, %arg6: memref<8x128xf32, #tpu.memory_space<vmem>>) attributes {dimension_semantics = [#tpu.dimension_semantics<parallel>], iteration_bounds = array<i64: 1>, scalar_prefetch = 0 : i64, scratch_operands = 0 : i64, tpu.core_type = #tpu.core_type<tc>, window_params = [{transform_indices = @transform_0, window_bounds = array<i64: 8, 784>}, {pipeline_mode = #tpu.pipeline_mode<synchronous>, transform_indices = @transform_1, window_bounds = array<i64: 784, 128>}, {pipeline_mode = #tpu.pipeline_mode<synchronous>, transform_indices = @transform_2, window_bounds = array<i64: 1, 128>}, {pipeline_mode = #tpu.pipeline_mode<synchronous>, transform_indices = @transform_3, window_bounds = array<i64: 128, 128>}, {pipeline_mode = #tpu.pipeline_mode<synchronous>, transform_indices = @transform_4, window_bounds = array<i64: 1, 128>}, {transform_indices = @transform_5, window_bounds = array<i64: 8, 128>}]} {
    %c0 = arith.constant 0 : index
    %c0_0 = arith.constant 0 : index
    %0 = vector.load %arg1[%c0, %c0_0] : memref<8x784xbf16, #tpu.memory_space<vmem>>, vector<8x784xbf16>
    %c0_1 = arith.constant 0 : index
    %c0_2 = arith.constant 0 : index
    %1 = vector.load %arg2[%c0_1, %c0_2] : memref<784x128xbf16, #tpu.memory_space<vmem>>, vector<784x128xbf16>
    %cst = arith.constant dense<0.000000e+00> : vector<8x128xf32>
    %2 = tpu.matmul %0, %1, %cst {dimension_numbers = #tpu.dot_dimension_numbers<[1], [0], [0], [1], [0, 0, 1, 1], [], []>} : vector<8x784xbf16>, vector<784x128xbf16>, vector<8x128xf32> -> vector<8x128xf32>
    %c0_3 = arith.constant 0 : index
    %c0_4 = arith.constant 0 : index
    %3 = vector.load %arg3[%c0_3, %c0_4] : memref<1x128xf32, #tpu.memory_space<vmem>>, vector<1x128xf32>
    %4 = vector.broadcast %3 : vector<1x128xf32> to vector<8x128xf32>
    %5 = arith.addf %2, %4 : vector<8x128xf32>
    %cst_5 = arith.constant 0.000000e+00 : f32
    %6 = vector.broadcast %cst_5 : f32 to vector<8x128xf32>
    %7 = arith.maximumf %5, %6 : vector<8x128xf32>
    %c0_6 = arith.constant 0 : index
    %c0_7 = arith.constant 0 : index
    %8 = vector.load %arg4[%c0_6, %c0_7] : memref<128x128xf32, #tpu.memory_space<vmem>>, vector<128x128xf32>
    %cst_8 = arith.constant dense<0.000000e+00> : vector<8x128xf32>
    %9 = tpu.matmul %7, %8, %cst_8 {dimension_numbers = #tpu.dot_dimension_numbers<[1], [0], [0], [1], [0, 0, 1, 1], [], []>} : vector<8x128xf32>, vector<128x128xf32>, vector<8x128xf32> -> vector<8x128xf32>
    %c0_9 = arith.constant 0 : index
    %c0_10 = arith.constant 0 : index
    %10 = vector.load %arg5[%c0_9, %c0_10] : memref<1x128xf32, #tpu.memory_space<vmem>>, vector<1x128xf32>
    %11 = vector.broadcast %10 : vector<1x128xf32> to vector<8x128xf32>
    %12 = arith.addf %9, %11 : vector<8x128xf32>
    %cst_11 = arith.constant dense<0xFF800000> : vector<8xf32>
    %13 = vector.multi_reduction <maximumf>, %12, %cst_11 [1] : vector<8x128xf32> to vector<8xf32>
    %14 = vector.shape_cast %13 : vector<8xf32> to vector<8x1xf32>
    %15 = vector.broadcast %14 : vector<8x1xf32> to vector<8x128xf32>
    %16 = arith.subf %12, %15 : vector<8x128xf32>
    %17 = math.exp %16 : vector<8x128xf32>
    %cst_12 = arith.constant dense<0.000000e+00> : vector<8xf32>
    %18 = vector.multi_reduction <add>, %17, %cst_12 [1] : vector<8x128xf32> to vector<8xf32>
    %19 = vector.shape_cast %18 : vector<8xf32> to vector<8x1xf32>
    %20 = math.log %19 : vector<8x1xf32>
    %21 = vector.broadcast %20 : vector<8x1xf32> to vector<8x128xf32>
    %22 = arith.subf %16, %21 : vector<8x128xf32>
    %c0_13 = arith.constant 0 : index
    %c0_14 = arith.constant 0 : index
    %23 = vector.load %arg6[%c0_13, %c0_14] : memref<8x128xf32, #tpu.memory_space<vmem>>, vector<8x128xf32>
    tpu.vector_store %arg6[%c0_13, %c0_14], %22 {strides = array<i32>} : memref<8x128xf32, #tpu.memory_space<vmem>>, vector<8x128xf32>,
    return
  }
  func.func @transform_0(%arg0: i32) -> (i32, i32) {
    %c0_i32 = arith.constant 0 : i32
    %c0_i32_0 = arith.constant 0 : i32
    return %arg0, %c0_i32 : i32, i32
  }
  func.func @transform_1(%arg0: i32) -> (i32, i32) {
    %c0_i32 = arith.constant 0 : i32
    %c0_i32_0 = arith.constant 0 : i32
    %c0_i32_1 = arith.constant 0 : i32
    return %c0_i32, %c0_i32_0 : i32, i32
  }
  func.func @transform_2(%arg0: i32) -> (i32, i32) {
    %c0_i32 = arith.constant 0 : i32
    %c0_i32_0 = arith.constant 0 : i32
    %c0_i32_1 = arith.constant 0 : i32
    return %c0_i32, %c0_i32_0 : i32, i32
  }
  func.func @transform_3(%arg0: i32) -> (i32, i32) {
    %c0_i32 = arith.constant 0 : i32
    %c0_i32_0 = arith.constant 0 : i32
    %c0_i32_1 = arith.constant 0 : i32
    return %c0_i32, %c0_i32_0 : i32, i32
  }
  func.func @transform_4(%arg0: i32) -> (i32, i32) {
    %c0_i32 = arith.constant 0 : i32
    %c0_i32_0 = arith.constant 0 : i32
    %c0_i32_1 = arith.constant 0 : i32
    return %c0_i32, %c0_i32_0 : i32, i32
  }
  func.func @transform_5(%arg0: i32) -> (i32, i32) {
    %c0_i32 = arith.constant 0 : i32
    %c0_i32_0 = arith.constant 0 : i32
    return %arg0, %c0_i32 : i32, i32
  }
}

</mosaic_0001>

<bundles_post_ra>
// kernel: mlp_forward.1
= control target key start
LH: loop header
LB: loop body
LE: loop exit
PB: predicated region body
PF: predicated region fallthrough
CT: control target
= control target key end

     0   :  { %s1135_s0 = inlined_call_operand.vmem [shape: bf16[8,784], index: 0, kind: input, shape index: {}]   ;;  %s1136_s1 = inlined_call_operand.vmem [shape: bf16[784,128], index: 1, kind: input, shape index: {}]   ;;  %s1137_s2 = inlined_call_operand.vmem [shape: f32[1,128], index: 2, kind: input, shape index: {}]   ;;  %s1138_s3 = inlined_call_operand.vmem [shape: f32[128,128], index: 3, kind: input, shape index: {}]   ;;  %s1139_s4 = inlined_call_operand.vmem [shape: f32[1,128], index: 4, kind: input, shape index: {}]   ;;  %s1140_s5 = inlined_call_operand.hbm [shape: f32[8,128], index: 5, kind: output, shape index: {}]  }
   0x1   :  { %v813_v0 = vld [vmem:[%s1136_s1 + $0x38] sm:$0xff]  ;;  %v812_v3 = vld [vmem:[%s1136_s1 + $0x30] sm:$0xff]  ;;  %v811_v8 = vld [vmem:[%s1136_s1 + $0x28] sm:$0xff] }
   0x2   :  { %v821_v1 = vld [vmem:[%s1136_s1 + $0x78] sm:$0xff]  ;;  %450 = vmatpush.bf16.msra.mxu0 %v813_v0  ;;  %v820_v4 = vld [vmem:[%s1136_s1 + $0x70] sm:$0xff]  ;;  %v819_v9 = vld [vmem:[%s1136_s1 + $0x68] sm:$0xff] }
   0x3   :  { %v829_v2 = vld [vmem:[%s1136_s1 + $0xb8] sm:$0xff]  ;;  %463 = vmatpush.bf16.msra.mxu1 %v821_v1  ;;  %v828_v5 = vld [vmem:[%s1136_s1 + $0xb0] sm:$0xff]  ;;  %v827_v10 = vld [vmem:[%s1136_s1 + $0xa8] sm:$0xff] }
   0x4   :  { %476 = vmatpush.bf16.msra.mxu2 %v829_v2  ;;  %v837_v6 = vld [vmem:[%s1136_s1 + $0xf8] sm:$0xff]  ;;  %v836_v7 = vld [vmem:[%s1136_s1 + $0xf0] sm:$0xff]  ;;  %v835_v11 = vld [vmem:[%s1136_s1 + $0xe8] sm:$0xff] }
   0x5   :  { %489 = vmatpush.bf16.msra.mxu3 %v837_v6  ;;  %v810_v12 = vld [vmem:[%s1136_s1 + $0x20] sm:$0xff]  ;;  %v809_v16 = vld [vmem:[%s1136_s1 + $0x18] sm:$0xff] }
   0x6   :  { %451 = vmatpush.bf16.msra.mxu0 %v812_v3  ;;  %v818_v13 = vld [vmem:[%s1136_s1 + $0x60] sm:$0xff]  ;;  %v817_v17 = vld [vmem:[%s1136_s1 + $0x58] sm:$0xff] }
   0x7   :  { %464 = vmatpush.bf16.msra.mxu1 %v820_v4  ;;  %v826_v14 = vld [vmem:[%s1136_s1 + $0xa0] sm:$0xff]  ;;  %v825_v18 = vld [vmem:[%s1136_s1 + $0x98] sm:$0xff] }
   0x8   :  { %477 = vmatpush.bf16.msra.mxu2 %v828_v5  ;;  %v834_v15 = vld [vmem:[%s1136_s1 + $0xe0] sm:$0xff] }
   0x9   :  { %490 = vmatpush.bf16.msra.mxu3 %v836_v7 }
   0xa   :  { %452 = vmatpush.bf16.msra.mxu0 %v811_v8 }
   0xb   :  { %465 = vmatpush.bf16.msra.mxu1 %v819_v9 }
   0xc   :  { %478 = vmatpush.bf16.msra.mxu2 %v827_v10 }
   0xd   :  { %491 = vmatpush.bf16.msra.mxu3 %v835_v11 }
   0xe   :  { %453 = vmatpush.bf16.msra.mxu0 %v810_v12 }
   0xf   :  { %466 = vmatpush.bf16.msra.mxu1 %v818_v13 }
  0x10   :  { %479 = vmatpush.bf16.msra.mxu2 %v826_v14 }
  0x11   :  { %10 = vsyncpa [#allocation3], 0  ;;  %492 = vmatpush.bf16.msra.mxu3 %v834_v15  ;;  %v833_v19 = vld [vmem:[%s1136_s1 + $0xd8] sm:$0xff]  ;;  %v808_v20 = vld [vmem:[%s1136_s1 + $0x10] sm:$0xff]  ;;  %vm446_vm0 = vcmask 130048   ;;  %s600_s8 = sshll.u32 %s1140_s5, 4  ;;  %s601_s8 = int_to_ptr.hbm [resolvable:$true] %s600_s8 }
  0x12   :  { %454 = vmatpush.bf16.msra.mxu0 %v809_v16  ;;  %v816_v21 = vld [vmem:[%s1136_s1 + $0x50] sm:$0xff]  ;;  %v807_v24 = vld [vmem:[%s1136_s1 + $0x8] sm:$0xff]  ;;  %v22_v26 = vld [vmem:[%s1135_s0] sm:$0xff] }
  0x13   :  { %467 = vmatpush.bf16.msra.mxu1 %v817_v17  ;;  %v824_v22 = vld [vmem:[%s1136_s1 + $0x90] sm:$0xff]  ;;  %v815_v25 = vld [vmem:[%s1136_s1 + $0x48] sm:$0xff]  ;;  %v132_v29 = vunpack.c.l.b16 %v22_v26  ;;  %v133_v31 = vunpack.c.h.b16 %v22_v26  ;;  %v806_v32 = vld [vmem:[%s1136_s1] sm:$0xff] }
  0x14   :  { %480 = vmatpush.bf16.msra.mxu2 %v825_v18  ;;  %v832_v23 = vld [vmem:[%s1136_s1 + $0xd0] sm:$0xff]  ;;  %v823_v27 = vld [vmem:[%s1136_s1 + $0x88] sm:$0xff]  ;;  %v814_v33 = vld [vmem:[%s1136_s1 + $0x40] sm:$0xff] }
  0x15   :  { %493 = vmatpush.bf16.msra.mxu3 %v833_v19  ;;  %v23_v28 = vld [vmem:[%s1135_s0 + $0x8] sm:$0xff]  ;;  %v845_v34 = vld [vmem:[%s1136_s1 + $0x138] sm:$0xff]  ;;  %v822_v36 = vld [vmem:[%s1136_s1 + $0x80] sm:$0xff]  ;;  %v139_v38 = vpack.c.b16 %v132_v29, %v132_v29  ;;  %v140_v39 = vpack.c.b16 %v133_v31, %v133_v31 }
  0x16   :  { %455 = vmatpush.bf16.msra.mxu0 %v808_v20  ;;  %v831_v30 = vld [vmem:[%s1136_s1 + $0xc8] sm:$0xff]  ;;  %v853_v35 = vld [vmem:[%s1136_s1 + $0x178] sm:$0xff]  ;;  %v134_v37 = vunpack.c.l.b16 %v23_v28  ;;  %v135_v40 = vunpack.c.h.b16 %v23_v28  ;;  %v830_v41 = vld [vmem:[%s1136_s1 + $0xc0] sm:$0xff] }
  0x17   :  { %468 = vmatpush.bf16.msra.mxu1 %v816_v21  ;;  %v854_v42 = vld [vmem:[%s1136_s1 + $0x180] sm:$0xff]  ;;  %v844_v43 = vld [vmem:[%s1136_s1 + $0x130] sm:$0xff]  ;;  %v843_v47 = vld [vmem:[%s1136_s1 + $0x128] sm:$0xff] }
  0x18   :  { %481 = vmatpush.bf16.msra.mxu2 %v824_v22  ;;  %v852_v44 = vld [vmem:[%s1136_s1 + $0x170] sm:$0xff]  ;;  %v141_v45 = vpack.c.b16 %v134_v37, %v134_v37  ;;  %v142_v46 = vpack.c.b16 %v135_v40, %v135_v40  ;;  %v851_v48 = vld [vmem:[%s1136_s1 + $0x168] sm:$0xff]  ;;  %v842_v49 = vld [vmem:[%s1136_s1 + $0x120] sm:$0xff] }
  0x19   :  { %494 = vmatpush.bf16.msra.mxu3 %v832_v23  ;;  %v850_v50 = vld [vmem:[%s1136_s1 + $0x160] sm:$0xff]  ;;  %v25_v51 = vld [vmem:[%s1135_s0 + $0x18] sm:$0xf]  ;;  %v840_v55 = vld [vmem:[%s1136_s1 + $0x110] sm:$0xff] }
  0x1a   :  { %456 = vmatpush.bf16.msra.mxu0 %v807_v24  ;;  %v841_v52 = vld [vmem:[%s1136_s1 + $0x118] sm:$0xff]  ;;  %v138_v54 = vunpack.c.l.b16 %v25_v51  ;;  %v848_v56 = vld [vmem:[%s1136_s1 + $0x150] sm:$0xff]  ;;  %v839_v58 = vld [vmem:[%s1136_s1 + $0x108] sm:$0xff] }
  0x1b   :  { %469 = vmatpush.bf16.msra.mxu1 %v815_v25  ;;  %v849_v53 = vld [vmem:[%s1136_s1 + $0x158] sm:$0xff]  ;;  %v847_v59 = vld [vmem:[%s1136_s1 + $0x148] sm:$0xff]  ;;  %v24_v60 = vld [vmem:[%s1135_s0 + $0x10] sm:$0xff] }
  0x1c   :  { %482 = vmatpush.bf16.msra.mxu2 %v823_v27  ;;  %v145_v57 = vpack.c.b16 %v138_v54, %v138_v54  ;;  %v136_v61 = vunpack.c.l.b16 %v24_v60  ;;  %v137_v62 = vunpack.c.h.b16 %v24_v60  ;;  %v838_v63 = vld [vmem:[%s1136_s1 + $0x100] sm:$0xff]  ;;  %v557_v3 = vld [vmem:[%s1138_s3 + $0x78] sm:$0xff]  ;;  %v556_v4 = vld [vmem:[%s1138_s3 + $0x70] sm:$0xff] }
  0x1d   :  { %495 = vmatpush.bf16.msra.mxu3 %v831_v30  ;;  %v846_v0 = vld [vmem:[%s1136_s1 + $0x140] sm:$0xff]  ;;  %v555_v5 = vld [vmem:[%s1138_s3 + $0x68] sm:$0xff]  ;;  %v553_v7 = vld [vmem:[%s1138_s3 + $0x58] sm:$0xff] }
  0x1e   :  { %457 = vmatpush.bf16.msra.mxu0 %v806_v32  ;;  %v143_v1 = vpack.c.b16 %v136_v61, %v136_v61  ;;  %v144_v2 = vpack.c.b16 %v137_v62, %v137_v62  ;;  %v554_v6 = vld [vmem:[%s1138_s3 + $0x60] sm:$0xff]  ;;  %v552_v8 = vld [vmem:[%s1138_s3 + $0x50] sm:$0xff]  ;;  %v551_v9 = vld [vmem:[%s1138_s3 + $0x48] sm:$0xff] }
  0x1f   :  { %470 = vmatpush.bf16.msra.mxu1 %v814_v33  ;;  %v550_v10 = vld [vmem:[%s1138_s3 + $0x40] sm:$0xff]  ;;  %v549_v11 = vld [vmem:[%s1138_s3 + $0x38] sm:$0xff]  ;;  %v548_v12 = vld [vmem:[%s1138_s3 + $0x30] sm:$0xff] }
  0x20   :  { %483 = vmatpush.bf16.msra.mxu2 %v822_v36  ;;  %v547_v13 = vld [vmem:[%s1138_s3 + $0x28] sm:$0xff]  ;;  %v546_v14 = vld [vmem:[%s1138_s3 + $0x20] sm:$0xff]  ;;  %v545_v15 = vld [vmem:[%s1138_s3 + $0x18] sm:$0xff] }
  0x21   :  { %458 = vmatmul.bf16.vlgmr.msra.gmra.mxu0 %v139_v38  ;;  %496 = vmatpush.bf16.msra.mxu3 %v830_v41  ;;  %v544_v18 = vld [vmem:[%s1138_s3 + $0x10] sm:$0xff]  ;;  %v543_v19 = vld [vmem:[%s1138_s3 + $0x8] sm:$0xff]  ;;  %v542_v20 = vld [vmem:[%s1138_s3] sm:$0xff] }
  0x22   :  { %502 = vmatpush.bf16.msrb.mxu0 %v845_v34  ;;  %471 = vmatmul.bf16.vlgmr.msra.gmra.mxu1 %v140_v39  ;;  %v856_v25 = vld [vmem:[%s1137_s2] ss:$0 sm:$0xff]  ;;  %s888_s2 = smov [#allocation2]  }
  0x23   :  { %515 = vmatpush.bf16.msrb.mxu1 %v853_v35  ;;  %484 = vmatmul.bf16.vlgmr.msra.gmra.mxu2 %v141_v45  ;;  %s598_s30 = sshll.u32 %s888_s2, 4  ;;  %s599_s30 = int_to_ptr.vmem [resolvable:$true] %s598_s30 }
  0x24   :  { %535 = vmatpush.bf16.msrb.mxu2 %v854_v42  ;;  %497 = vmatmul.bf16.vlgmr.msra.gmra.mxu3 %v142_v46  ;;  %v857_v42 = vld [vmem:[%s1139_s4] ss:$0 sm:$0xff] }
  0x25   :  { %562 = vmatpush.msrb.mxu3 %v557_v3 }
  0x26   :  { %503 = vmatpush.bf16.msrb.mxu0 %v844_v43 }
  0x27   :  { %516 = vmatpush.bf16.msrb.mxu1 %v852_v44  ;;  %563 = vmatpush.msrb.mxu3 %v556_v4 }
  0x29   :  { %564 = vmatpush.msrb.mxu3 %v555_v5 }
  0x2a   :  { %504 = vmatpush.bf16.msrb.mxu0 %v843_v47 }
  0x2b   :  { %517 = vmatpush.bf16.msrb.mxu1 %v851_v48  ;;  %565 = vmatpush.msrb.mxu3 %v554_v6 }
  0x2d   :  { %566 = vmatpush.msrb.mxu3 %v553_v7 }
  0x2e   :  { %505 = vmatpush.bf16.msrb.mxu0 %v842_v49 }
  0x2f   :  { %518 = vmatpush.bf16.msrb.mxu1 %v850_v50  ;;  %567 = vmatpush.msrb.mxu3 %v552_v8 }
  0x31   :  { %568 = vmatpush.msrb.mxu3 %v551_v9 }
  0x32   :  { %506 = vmatpush.bf16.msrb.mxu0 %v841_v52 }
  0x33   :  { %519 = vmatpush.bf16.msrb.mxu1 %v849_v53  ;;  %805 = vmatmul.msk.bf16.vlgmr.msrb.gmra.mxu2 %vm446_vm0, %v145_v57 }
  0x34   :  { %569 = vmatpush.msrb.mxu3 %v550_v10 }
  0x36   :  { %507 = vmatpush.bf16.msrb.mxu0 %v840_v55  ;;  %570 = vmatpush.msrb.mxu3 %v549_v11 }
  0x37   :  { %520 = vmatpush.bf16.msrb.mxu1 %v848_v56 }
  0x38   :  { %571 = vmatpush.msrb.mxu3 %v548_v12 }
  0x3a   :  { %508 = vmatpush.bf16.msrb.mxu0 %v839_v58  ;;  %572 = vmatpush.msrb.mxu3 %v547_v13 }
  0x3b   :  { %521 = vmatpush.bf16.msrb.mxu1 %v847_v59 }
  0x3c   :  { %573 = vmatpush.msrb.mxu3 %v546_v14 }
  0x3e   :  { %509 = vmatpush.bf16.msrb.mxu0 %v838_v63  ;;  %574 = vmatpush.msrb.mxu3 %v545_v15 }
  0x3f   :  { %522 = vmatpush.bf16.msrb.mxu1 %v846_v0 }
  0x40   :  { %575 = vmatpush.msrb.mxu3 %v544_v18 }
  0x41   :  { %510 = vmatmul.bf16.vlgmr.msrb.gmra.mxu0 %v143_v1 }
  0x42   :  { %523 = vmatmul.bf16.vlgmr.msrb.gmra.mxu1 %v144_v2  ;;  %576 = vmatpush.msrb.mxu3 %v543_v19 }
  0x44   :  { %577 = vmatpush.msrb.mxu3 %v542_v20 }
  0x9e   :  { %v459_v16 = vpop.f32.mrf.mxu0 }
  0x9f   :  { %v472_v17 = vpop.f32.mrf.mxu1  ;;  %v460_v26 = vadd.f32 %v856_v25, %v459_v16 }
  0xa1   :  { %v473_v29 = vadd.f32 %v472_v17, %v460_v26 }
  0xa6   :  { %v461_v21 = vpop.f32.mrf.mxu0  ;;  %v485_v23 = vpop.f32.mrf.mxu2 }
  0xa7   :  { %v474_v22 = vpop.f32.mrf.mxu1  ;;  %v498_v24 = vpop.f32.mrf.mxu3  ;;  %v486_v30 = vadd.f32 %v485_v23, %v473_v29 }
  0xa9   :  { %v499_v32 = vadd.f32 %v498_v24, %v486_v30 }
  0xae   :  { %v487_v27 = vpop.f32.mrf.mxu2 }
  0xaf   :  { %v500_v28 = vpop.f32.mrf.mxu3 }
  0xb6   :  { %v537_v31 = vpop.f32.mrf.mxu2 }
  0xbe   :  { %v511_v33 = vpop.f32.mrf.mxu0  ;;  %v539_v37 = vpop.f32.mrf.mxu2 }
  0xbf   :  { %v524_v34 = vpop.f32.mrf.mxu1  ;;  %v512_v35 = vadd.f32 %v511_v33, %v499_v32 }
  0xc1   :  { %v525_v36 = vadd.f32 %v524_v34, %v512_v35 }
  0xc3   :  { %v538_v38 = vadd.f32 %v537_v31, %v525_v36 }
  0xc5   :  { %v541_v39 = vmax.f32 %v538_v38, 0.0 }
  0xc6   :  { %v513_v40 = vpop.f32.mrf.mxu0 }
  0xc7   :  { %v526_v41 = vpop.f32.mrf.mxu1  ;;  %578 = vmatmul.f32.vlgmr.msrb.gmra.mxu3 %v541_v39 }
 0x14a   :  { %v579_v43 = vpop.f32.mrf.mxu3 }
 0x14b   :  { %v580_v44 = vadd.f32 %v857_v42, %v579_v43 }
 0x14d   :  { %582 = vmax.xlane.f32.xlu0 %v580_v44 }
 0x1c0   :  { %v583_v45 = vpop.xlane.xlu0 %582 }
 0x1c1   :  { %v584_v46 = vsub.f32 %v580_v44, %v583_v45 }
 0x1c3   :  { %v585_v47 = vmul.f32 1.442695, %v584_v46 }
 0x1c5   :  { %858 = vpow2.f32 %v585_v47 }
 0x1cb   :  { %v859_v48 = vpop.eup %858 }
 0x1cc   :  { %587 = vadd.xlane.f32.xlu0 %v859_v48 }
 0x23f   :  { %v588_v49 = vpop.xlane.xlu0 %587 }
 0x240   :  { %860 = vlog2.f32 %v588_v49 }
 0x246   :  { %v861_v50 = vpop.eup %860 }
 0x247   :  { %v590_v51 = vmul.f32 0.6931472, %v861_v50 }
 0x249   :  { %v591_v52 = vsub.f32 %v584_v46, %v590_v51 }
 0x24b   :  { %592 = vst [vmem:[#allocation2] sm:$0xff] %v591_v52 }
 0x24c   :  { %603 = dma.vmem_to_hbm [thread:$0]  %s599_s30, 128, %s601_s8, [#allocation3]  }
 0x24d   :  { %886 = dma.done.wait [#allocation3], 128  }
 0x24e   :  { %887 = vsyncadd [#allocation3], 4294967168 }
 0x24f   :  { %608 = vsyncpa [#allocation3], 1 }

</bundles_post_ra>
